<compile_context>
chip_gen: v6e
topology: v6e:2x2x1
jax: 0.10.0
libtpu: 0.0.40
codegen_flags: <defaults>
</compile_context>

<pallas_src>
import functools

import jax
import jax.numpy as jnp
from jax import lax
from jax.experimental import pallas as pl
from jax.experimental.pallas import tpu as pltpu

OUT_DIMS = (128, 512, 1028)    # logical GATv2Conv out_channels (1028 per torch spec)
PAD_DIMS = (128, 512, 1152)    # lane-padded per-head channel widths (x128 multiples)


def _round_up(v, m):
    return (v + m - 1) // m * m


def _tpu_vmem_bytes():
    """Physical VMEM per core; conservative 64 MiB fallback (v7x-sized)."""
    try:
        info = pltpu.get_tpu_info()
        for attr in ("vmem_capacity_bytes", "vmem_bytes", "vmem_size_bytes"):
            v = getattr(info, attr, None)
            if v:
                return int(v)
    except Exception:
        pass
    return 64 * 1024 * 1024


_VMEM_CAP = _tpu_vmem_bytes()
# v5e/v6e (128 MiB physical): 64 MiB scoped limit, bigger tiles.
# v7x (64 MiB physical): 32 MiB scoped limit, smaller tiles.
VMEM_LIMIT = min(_VMEM_CAP // 2, 100 * 1024 * 1024)
_TM_DEFAULT = 512 if _VMEM_CAP >= 96 * 1024 * 1024 else 256
_TN_DEFAULT = 512


# ----------------------------- linear kernel --------------------------------

def _linear_kernel(x_ref, w_ref, b_ref, o_ref, *, apply_leaky, slope):
    y = jnp.dot(x_ref[...], w_ref[...], preferred_element_type=jnp.float32)
    y = y + b_ref[...]
    if apply_leaky:
        y = jnp.where(y > 0.0, y, slope * y)
    o_ref[...] = y


def linear(x, w, b, *, act=False, slope=0.01, tm=None, tn=None):
    """y = x @ w + b, optional fused LeakyReLU.  x:[M,K]  w:[K,N]  b:[N].

    Tiled over (M, N); both grid axes "parallel" so the 2 TCs on v7x can each
    take half, and BlockSpec double-buffering pipelines HBM<->VMEM.  K (<=1152
    here) stays whole.  Tile sizes are generation-dependent (bigger on
    v5e/v6e's 128 MiB VMEM to cut weight re-streaming / step overhead).
    """
    tm = _TM_DEFAULT if tm is None else tm
    tn = _TN_DEFAULT if tn is None else tn
    M, K = x.shape
    _, N = w.shape
    x = x.astype(jnp.float32)
    w = w.astype(jnp.float32)
    b = b.astype(jnp.float32).reshape(1, N)

    Mp = _round_up(max(M, 8), 8)                   # keep sublane dim legal
    if Mp != M:
        x = jnp.pad(x, ((0, Mp - M), (0, 0)))
    tm = min(tm, Mp)
    tn = tn if (N % 128 == 0 and N >= 128) else N  # lane-legal tile or full width
    tn = min(tn, N)
    grid = (pl.cdiv(Mp, tm), pl.cdiv(N, tn))

    kern = functools.partial(_linear_kernel, apply_leaky=act, slope=slope)
    out = pl.pallas_call(
        kern,
        out_shape=jax.ShapeDtypeStruct((Mp, N), jnp.float32),
        grid=grid,
        in_specs=[pl.BlockSpec((tm, K), lambda i, j: (i, 0)),
                  pl.BlockSpec((K, tn), lambda i, j: (0, j)),
                  pl.BlockSpec((1, tn), lambda i, j: (0, j))],
        out_specs=pl.BlockSpec((tm, tn), lambda i, j: (i, j)),
        compiler_params=pltpu.CompilerParams(
            dimension_semantics=("parallel", "parallel"),
            vmem_limit_bytes=VMEM_LIMIT),
    )(x, w, b)
    return out[:M] if Mp != M else out


# --------------------------- GATv2 attention kernel --------------------------

def _gat_attn_kernel(dstc_ref, dstr_ref, xl_ref, xr_ref, ep_ref, att_ref,
                     bias_ref, o_ref, oh_en_ref, oh_ne_ref, neg_ref, *,
                     num_heads, apply_leaky, slope):
    h = pl.program_id(0)
    E, Nn = oh_en_ref.shape

    @pl.when(h == 0)
    def _init():
        # Head-invariant incidence one-hots + additive -inf mask, built once.
        dst_c = dstc_ref[...]                                   # (E, 1), -1 = pad
        dst_r = dstr_ref[...]                                   # (1, E)
        col_ids = lax.broadcasted_iota(jnp.int32, (E, Nn), 1)
        row_ids = lax.broadcasted_iota(jnp.int32, (Nn, E), 0)
        inc_en = col_ids == dst_c                               # (E, Nn)
        oh_en_ref[...] = inc_en.astype(jnp.float32)
        oh_ne_ref[...] = (row_ids == dst_r).astype(jnp.float32)
        neg_ref[...] = jnp.where(inc_en, jnp.float32(0.0), jnp.float32(-1e30))
        o_ref[...] = jnp.zeros_like(o_ref)                      # head accumulator

    oh_en = oh_en_ref[...]                                      # (E, Nn)
    oh_ne = oh_ne_ref[...]                                      # (Nn, E)
    neg_en = neg_ref[...]                                       # (E, Nn)

    xl = xl_ref[...]                                            # (E, C)  lin_l(x)[src]
    # dst gather folded onto the MXU: xr_e = one_hot(dst) @ lin_r(x)  (exact).
    xr_e = jnp.dot(oh_en, xr_ref[...], preferred_element_type=jnp.float32)
    m = xl + xr_e + ep_ref[...]                                 # GATv2 message
    m = jnp.where(m > 0.0, m, 0.2 * m)                          # LeakyReLU(0.2)
    # attention logits on the MXU: (E, C) @ (C, 1) -> (E, 1)
    logits = jnp.dot(m, att_ref[...], preferred_element_type=jnp.float32)

    # Segment softmax over edges grouped by target node (cached mask, no
    # per-head iota/compare/select).
    seg_max = jnp.max(logits + neg_en, axis=0, keepdims=True)   # (1, Nn)
    max_e = jnp.max(seg_max + neg_en, axis=1, keepdims=True)    # (E, 1) gather
    e = jnp.exp(jnp.minimum(logits - max_e, 0.0))               # clamp: pad edges -> 1
    denom_n = jnp.dot(oh_ne, e, preferred_element_type=jnp.float32)        # (Nn, 1)
    denom_e = jnp.dot(oh_en, denom_n, preferred_element_type=jnp.float32)  # (E, 1)
    d_safe = jnp.maximum(denom_e, jnp.float32(1e-30))
    inv = pl.reciprocal(d_safe, approx=True)                    # EUP
    inv = inv * (2.0 - d_safe * inv)                            # Newton -> ~f32 exact
    alpha = jnp.where(denom_e > 0.0, e, 0.0) * inv              # padded edges -> 0

    # Aggregate alpha-weighted source features per target node on the MXU,
    # accumulating directly into the VMEM-resident output tile.
    o_ref[...] += jnp.dot(oh_ne, alpha * xl, preferred_element_type=jnp.float32)

    @pl.when(h == num_heads - 1)
    def _finalize():
        out = o_ref[...] * jnp.float32(1.0 / num_heads) + bias_ref[...]
        if apply_leaky:
            out = jnp.where(out > 0.0, out, slope * out)        # encoder LeakyReLU(0.01)
        o_ref[...] = out


def gat_attention(dst, xl_e, xr_nodes, ep_e, att, bias, num_nodes, *, heads,
                  cdim, act, slope=0.01):
    """GATv2 attention+aggregation.

    dst:[E] int32 target ids, xl_e/ep_e:[E, H*C] per-edge projections,
    xr_nodes:[Nn, H*C] node-level lin_r(x) (dst gather done in-kernel),
    att:[H, C], bias:[C] -> [num_nodes, C].
    """
    E = dst.shape[0]
    dst = dst.astype(jnp.int32)
    Ep = _round_up(max(E, 8), 128)                 # lane-dense edge axis
    Nnp = _round_up(max(num_nodes, 8), 128)        # lane-dense node axis (exact: pads never match dst)
    if Ep != E:
        pad = Ep - E
        dst = jnp.concatenate([dst, jnp.full((pad,), -1, jnp.int32)])
        xl_e = jnp.pad(xl_e, ((0, pad), (0, 0)))
        ep_e = jnp.pad(ep_e, ((0, pad), (0, 0)))
    if Nnp != num_nodes:
        xr_nodes = jnp.pad(xr_nodes, ((0, Nnp - num_nodes), (0, 0)))
    dst_col = dst.reshape(Ep, 1)
    dst_row = dst.reshape(1, Ep)
    att_col = att.astype(jnp.float32).reshape(heads * cdim, 1)
    bias_row = bias.astype(jnp.float32).reshape(1, cdim)

    kern = functools.partial(_gat_attn_kernel, num_heads=heads,
                             apply_leaky=act, slope=slope)
    out = pl.pallas_call(
        kern,
        out_shape=jax.ShapeDtypeStruct((Nnp, cdim), jnp.float32),
        grid=(heads,),                                 # head loop as grid axis
        in_specs=[pl.BlockSpec((Ep, 1), lambda h: (0, 0)),       # dst column ids
                  pl.BlockSpec((1, Ep), lambda h: (0, 0)),       # dst row ids
                  pl.BlockSpec((Ep, cdim), lambda h: (0, h)),    # xl head slice (per edge)
                  pl.BlockSpec((Nnp, cdim), lambda h: (0, h)),   # xr head slice (per node)
                  pl.BlockSpec((Ep, cdim), lambda h: (0, h)),    # edge-proj head slice
                  pl.BlockSpec((cdim, 1), lambda h: (h, 0)),     # att head column
                  pl.BlockSpec((1, cdim), lambda h: (0, 0))],    # bias
        out_specs=pl.BlockSpec((Nnp, cdim), lambda h: (0, 0)),   # resident accumulator
        scratch_shapes=[pltpu.VMEM((Ep, Nnp), jnp.float32),      # one_hot (edge, node)
                        pltpu.VMEM((Nnp, Ep), jnp.float32),      # one_hot (node, edge)
                        pltpu.VMEM((Ep, Nnp), jnp.float32)],     # -inf mask
        compiler_params=pltpu.CompilerParams(
            dimension_semantics=("arbitrary",),
            vmem_limit_bytes=VMEM_LIMIT),
    )(dst_col, dst_row, xl_e, xr_nodes, ep_e, att_col, bias_row)
    return out[:num_nodes]


# ------------------------------ JAX glue ------------------------------------

def _augment_with_self_loops(edge_index, edge_attr, num_nodes):
    """GATv2Conv default: add_self_loops=True, fill_value='mean'."""
    # TODO(synk): assumes the incoming edge_index has no pre-existing self loops.
    src, dst = edge_index[0], edge_index[1]
    deg = jnp.zeros((num_nodes,), jnp.float32).at[dst].add(1.0)
    sums = jnp.zeros((num_nodes, edge_attr.shape[1]), jnp.float32).at[dst].add(edge_attr)
    loop_attr = sums / jnp.maximum(deg, 1.0)[:, None]
    ar = jnp.arange(num_nodes, dtype=src.dtype)
    aug_src = jnp.concatenate([src, ar])
    aug_dst = jnp.concatenate([dst, ar])
    aug_attr = jnp.concatenate([edge_attr, loop_attr], axis=0)
    return aug_src, aug_dst, aug_attr


def _pad_head_cols(w, heads, c, cpad):
    din = w.shape[0]
    w = jnp.pad(w.reshape(din, heads, c), ((0, 0), (0, 0), (0, cpad - c)))
    return w.reshape(din, heads * cpad)


def _pad_head_vec(v, heads, c, cpad):
    return jnp.pad(v.reshape(heads, c), ((0, 0), (0, cpad - c))).reshape(heads * cpad)


def init_params(key, node_dim, edge_dim, heads):
    params = {'convs': [], 'dec': {}}
    in_dims = (node_dim,) + OUT_DIMS[:-1]
    for din, dout in zip(in_dims, OUT_DIMS):
        key, kwl, kbl, kwr, kbr, kwe, katt, kb = jax.random.split(key, 8)
        hc = heads * dout
        s_in = 1.0 / jnp.sqrt(jnp.float32(din))
        s_e = 1.0 / jnp.sqrt(jnp.float32(edge_dim))
        s_att = 1.0 / jnp.sqrt(jnp.float32(dout))
        params['convs'].append({
            'wl': jax.random.normal(kwl, (din, hc), jnp.float32) * s_in,
            'bl': jax.random.normal(kbl, (hc,), jnp.float32) * 0.1,
            'wr': jax.random.normal(kwr, (din, hc), jnp.float32) * s_in,
            'br': jax.random.normal(kbr, (hc,), jnp.float32) * 0.1,
            'we': jax.random.normal(kwe, (edge_dim, hc), jnp.float32) * s_e,
            'att': jax.random.normal(katt, (heads, dout), jnp.float32) * s_att,
            'bias': jax.random.normal(kb, (dout,), jnp.float32) * 0.1,
        })
    for idx, (din, dout) in enumerate(((1028, 512), (512, 128), (128, 2)), start=1):
        key, kw, kb = jax.random.split(key, 3)
        s = 1.0 / jnp.sqrt(jnp.float32(din))
        params['dec'][f'w{idx}'] = jax.random.normal(kw, (din, dout), jnp.float32) * s
        params['dec'][f'b{idx}'] = jax.random.normal(kb, (dout,), jnp.float32) * 0.1
    return params


def anet_forward_pallas(params, x, edge_index, edge_attr, heads):
    Nn = x.shape[0]
    aug_src, aug_dst, aug_ea = _augment_with_self_loops(edge_index, edge_attr, Nn)

    h = x.astype(jnp.float32)
    for li, conv in enumerate(params['convs']):
        C, Cp = OUT_DIMS[li], PAD_DIMS[li]
        wl, bl, wr, br = conv['wl'], conv['bl'], conv['wr'], conv['br']
        we, att, bias = conv['we'], conv['att'], conv['bias']
        if Cp != C:   # lane-pad 1028 -> 1152 with zeros (exact, removes masked stores)
            wl, bl = _pad_head_cols(wl, heads, C, Cp), _pad_head_vec(bl, heads, C, Cp)
            wr, br = _pad_head_cols(wr, heads, C, Cp), _pad_head_vec(br, heads, C, Cp)
            we = _pad_head_cols(we, heads, C, Cp)
            att = jnp.pad(att, ((0, 0), (0, Cp - C)))
            bias = jnp.pad(bias, ((0, Cp - C),))
        xl = linear(h, wl, bl)                                         # lin_l(x)  (node level)
        xr = linear(h, wr, br)                                         # lin_r(x)  (node level)
        ep = linear(aug_ea, we, jnp.zeros((heads * Cp,), jnp.float32)) # lin_edge (no bias)
        # src gather stays in XLA for now (dst gather folded into the kernel).
        # TODO(synk): move the src gather to in-kernel scalar-prefetch DMA.
        xl_e = jnp.take(xl, aug_src, axis=0)                           # (Ea, H*Cp)
        h = gat_attention(aug_dst, xl_e, xr, ep, att, bias, Nn,
                          heads=heads, cdim=Cp, act=(li < 2))
    d = params['dec']
    w1 = d['w1']
    if PAD_DIMS[2] != OUT_DIMS[2]:
        w1 = jnp.pad(w1, ((0, PAD_DIMS[2] - OUT_DIMS[2]), (0, 0)))     # zero rows (exact)
    z = linear(h, w1, d['b1'], act=True)
    z = linear(z, d['w2'], d['b2'], act=True)
    # Lane-dense tail: pad Linear(128, 2) to 128 output lanes, slice after.
    w3 = jnp.pad(d['w3'], ((0, 0), (0, 128 - d['w3'].shape[1])))
    b3 = jnp.pad(d['b3'], ((0, 128 - d['b3'].shape[0]),))
    z = linear(z, w3, b3, act=False)[:, :d['w3'].shape[1]]
    return z.reshape(-1)                                               # z.view(-1)


# Pure-JAX reference (independent segment ops) for a correctness check.
def _leaky(v, slope):
    return jnp.where(v > 0, v, slope * v)


def anet_forward_ref(params, x, edge_index, edge_attr, heads):
    Nn = x.shape[0]
    aug_src, aug_dst, aug_ea = _augment_with_self_loops(edge_index, edge_attr, Nn)
    Ea = aug_src.shape[0]
    h = x.astype(jnp.float32)
    for li, conv in enumerate(params['convs']):
        C = OUT_DIMS[li]
        xl = h @ conv['wl'] + conv['bl']
        xr = h @ conv['wr'] + conv['br']
        ep = aug_ea @ conv['we']
        xl_e = xl[aug_src].reshape(Ea, heads, C)
        xr_e = xr[aug_dst].reshape(Ea, heads, C)
        ep_e = ep.reshape(Ea, heads, C)
        m = _leaky(xl_e + xr_e + ep_e, 0.2)
        logits = jnp.sum(m * conv['att'][None], axis=-1)               # (Ea, H)
        maxn = jax.ops.segment_max(logits, aug_dst, num_segments=Nn)
        ea = jnp.exp(logits - maxn[aug_dst])
        denom = jax.ops.segment_sum(ea, aug_dst, num_segments=Nn)
        alpha = ea / denom[aug_dst]
        out = jax.ops.segment_sum(alpha[:, :, None] * xl_e, aug_dst, num_segments=Nn)
        out = out.mean(axis=1) + conv['bias']
        if li < 2:
            out = _leaky(out, 0.01)
        h = out
    d = params['dec']
    z = _leaky(h @ d['w1'] + d['b1'], 0.01)
    z = _leaky(z @ d['w2'] + d['b2'], 0.01)
    z = z @ d['w3'] + d['b3']
    return z.reshape(-1)


if __name__ == "__main__":
    NODE_DIM, EDGE_DIM, HEADS = 16, 8, 4   # heads passed via **kwargs (default 32)
    N_NODES, N_EDGES = 8, 16

    key = jax.random.PRNGKey(0)
    kx, ks, kd, ke, kp = jax.random.split(key, 5)
    x = jax.random.normal(kx, (N_NODES, NODE_DIM), jnp.float32)
    src = jax.random.randint(ks, (N_EDGES,), 0, N_NODES, dtype=jnp.int32)
    dst = jax.random.randint(kd, (N_EDGES,), 0, N_NODES, dtype=jnp.int32)
    dst = jnp.where(src == dst, (dst + 1) % N_NODES, dst)   # no self loops in input
    edge_index = jnp.stack([src, dst])
    edge_attr = jax.random.normal(ke, (N_EDGES, EDGE_DIM), jnp.float32)

    params = init_params(kp, NODE_DIM, EDGE_DIM, HEADS)

    out = anet_forward_pallas(params, x, edge_index, edge_attr, HEADS)
    out = jax.block_until_ready(out)

    ref = anet_forward_ref(params, x, edge_index, edge_attr, HEADS)
    assert out.shape == (2 * N_NODES,)
    assert jnp.allclose(out, ref, rtol=2e-3, atol=2e-3), (out, ref)
    print("KERNEL_OK")
</pallas_src>

<mosaic_0001>
module attributes {stable_mosaic.version = 11 : i64} {
  func.func @_linear_kernel(%arg0: i32, %arg1: i32, %arg2: memref<8x16xf32, #tpu.memory_space<vmem>>, %arg3: memref<16x512xf32, #tpu.memory_space<vmem>>, %arg4: memref<1x512xf32, #tpu.memory_space<vmem>>, %arg5: memref<8x512xf32, #tpu.memory_space<vmem>>) attributes {dimension_semantics = [#tpu.dimension_semantics<parallel>, #tpu.dimension_semantics<parallel>], iteration_bounds = array<i64: 1, 1>, scalar_prefetch = 0 : i64, scratch_operands = 0 : i64, tpu.core_type = #tpu.core_type<tc>, window_params = [{transform_indices = @transform_0, window_bounds = array<i64: 8, 16>}, {transform_indices = @transform_1, window_bounds = array<i64: 16, 512>}, {transform_indices = @transform_2, window_bounds = array<i64: 1, 512>}, {transform_indices = @transform_3, window_bounds = array<i64: 8, 512>}]} {
    %c0 = arith.constant 0 : index
    %c0_0 = arith.constant 0 : index
    %0 = vector.load %arg2[%c0, %c0_0] : memref<8x16xf32, #tpu.memory_space<vmem>>, vector<8x16xf32>
    %c0_1 = arith.constant 0 : index
    %c0_2 = arith.constant 0 : index
    %1 = vector.load %arg3[%c0_1, %c0_2] : memref<16x512xf32, #tpu.memory_space<vmem>>, vector<16x512xf32>
    %cst = arith.constant dense<0.000000e+00> : vector<8x512xf32>
    %2 = tpu.matmul %0, %1, %cst {dimension_numbers = #tpu.dot_dimension_numbers<[1], [0], [0], [1], [0, 0, 1, 1], [], []>} : vector<8x16xf32>, vector<16x512xf32>, vector<8x512xf32> -> vector<8x512xf32>
    %c0_3 = arith.constant 0 : index
    %c0_4 = arith.constant 0 : index
    %3 = vector.load %arg4[%c0_3, %c0_4] : memref<1x512xf32, #tpu.memory_space<vmem>>, vector<1x512xf32>
    %4 = vector.broadcast %3 : vector<1x512xf32> to vector<8x512xf32>
    %5 = arith.addf %2, %4 : vector<8x512xf32>
    %c0_5 = arith.constant 0 : index
    %c0_6 = arith.constant 0 : index
    %6 = vector.load %arg5[%c0_5, %c0_6] : memref<8x512xf32, #tpu.memory_space<vmem>>, vector<8x512xf32>
    tpu.vector_store %arg5[%c0_5, %c0_6], %5 {strides = array<i32>} : memref<8x512xf32, #tpu.memory_space<vmem>>, vector<8x512xf32>,
    return
  }
  func.func @transform_0(%arg0: i32, %arg1: i32) -> (i32, i32) {
    %c0_i32 = arith.constant 0 : i32
    %c0_i32_0 = arith.constant 0 : i32
    return %arg0, %c0_i32 : i32, i32
  }
  func.func @transform_1(%arg0: i32, %arg1: i32) -> (i32, i32) {
    %c0_i32 = arith.constant 0 : i32
    %c0_i32_0 = arith.constant 0 : i32
    return %c0_i32, %arg1 : i32, i32
  }
  func.func @transform_2(%arg0: i32, %arg1: i32) -> (i32, i32) {
    %c0_i32 = arith.constant 0 : i32
    %c0_i32_0 = arith.constant 0 : i32
    return %c0_i32, %arg1 : i32, i32
  }
  func.func @transform_3(%arg0: i32, %arg1: i32) -> (i32, i32) {
    %c0_i32 = arith.constant 0 : i32
    return %arg0, %arg1 : i32, i32
  }
}

</mosaic_0001>

<bundles_post_ra>
// kernel: tpu_custom_call.1
= control target key start
LH: loop header
LB: loop body
LE: loop exit
PB: predicated region body
PF: predicated region fallthrough
CT: control target
= control target key end

     0   :  { %8 = vsyncpa [#allocation3], 0  ;;  %s383_s0 = inlined_call_operand.hbm [shape: f32[8,16], index: 0, kind: input, shape index: {}]   ;;  %s384_s1 = inlined_call_operand.hbm [shape: f32[16,512], index: 1, kind: input, shape index: {}]   ;;  %s385_s2 = inlined_call_operand.hbm [shape: f32[1,512], index: 2, kind: input, shape index: {}]   ;;  %s386_s3 = inlined_call_operand.hbm [shape: f32[8,512], index: 3, kind: output, shape index: {}]  }
   0x1   :  { %9 = vsyncpa [#allocation6], 0 }
   0x2   :  { %10 = vsyncpa [#allocation4], 0  ;;  %s344_s12 = smov [#allocation5]  }
   0x3   :  { %s26_s13 = sshll.u32 %s344_s12, 4  ;;  %s27_s13 = int_to_ptr.vmem [resolvable:$true] %s26_s13 }
   0x4   :  { %s266_s14 = scalar_lea.vmem %s27_s13, 1024  ;;  %p271_p1 = scmp.lt.s32.totalorder %s27_s13, %s27_s13 }
   0x5   :  { %p267_p0 = scmp.ne.s32.totalorder %s27_s13, %s266_s14  ;;  %p272_p2 = scmp.lt.s32.totalorder %s266_s14, %s266_s14 }
   0x7   :  { %p273_p3 = por %p272_p2, %p271_p1 }
   0x9   :  { %p274_p4 = pnand %p273_p3, %p267_p0 }
   0xb   :  { %277 = shalt.err (!%p274_p4)
}
   0xc   :  { %s345_s15 = smov 512   ;;  %s346_s16 = smov 32  }
   0xd   :  { %32 = dma.hbm_to_vmem [thread:$0]  %s384_s1, 1024, %s27_s13, [#allocation6], %s345_s15, %s345_s15, %s346_s16  }
   0xe   :  { %s347_s19 = smov [#allocation2]   ;;  %s348_s21 = smov [#allocation7]  }
   0xf   :  { %s17_s20 = sshll.u32 %s347_s19, 4  ;;  %s39_s22 = sshll.u32 %s348_s21, 4  ;;  %s18_s20 = int_to_ptr.vmem [resolvable:$true] %s17_s20  ;;  %s40_s22 = int_to_ptr.vmem [resolvable:$true] %s39_s22 }
  0x10   :  { %s286_s23 = scalar_lea.vmem %s18_s20, 128  ;;  %p291_p6 = scmp.lt.s32.totalorder %s18_s20, %s18_s20 }
  0x11   :  { %p287_p5 = scmp.ne.s32.totalorder %s18_s20, %s286_s23  ;;  %p292_p7 = scmp.lt.s32.totalorder %s286_s23, %s286_s23 }
  0x13   :  { %p293_p8 = por %p292_p7, %p291_p6 }
  0x15   :  { %p294_p9 = pnand %p293_p8, %p287_p5 }
  0x17   :  { %297 = shalt.err (!%p294_p9)
}
  0x18   :  { %20 = dma.hbm_to_vmem [thread:$0]  %s383_s0, 128, %s18_s20, [#allocation3]  }
  0x19   :  { %s306_s26 = scalar_lea.vmem %s40_s22, 64  ;;  %p311_p11 = scmp.lt.s32.totalorder %s40_s22, %s40_s22 }
  0x1a   :  { %p307_p10 = scmp.ne.s32.totalorder %s40_s22, %s306_s26  ;;  %p312_p12 = scmp.lt.s32.totalorder %s306_s26, %s306_s26 }
  0x1c   :  { %p313_p13 = por %p312_p12, %p311_p11 }
  0x1e   :  { %p314_p0 = pnand %p313_p13, %p307_p10 }
  0x20   :  { %317 = shalt.err (!%p314_p0)
}
  0x21   :  { %42 = dma.hbm_to_vmem [thread:$0]  %s385_s2, 64, %s40_s22, [#allocation6]  }
  0x22   :  { %338 = dma.done.wait [#allocation3], 128  }
  0x23   :  { %339 = vsyncadd [#allocation3], 4294967168 }
  0x24   :  { %340 = dma.done.wait [#allocation6], 1088  }
  0x25   :  { %341 = vsyncadd [#allocation6], 4294966208  ;;  %v349_v0 = vmov 0.0   ;;  %v58_v1 = vld [vmem:[#allocation5 + $0x28] sm:$0xff]  ;;  %v60_v2 = vld [vmem:[#allocation5 + $0x38] sm:$0xff]  ;;  %vm83_vm0 = vcmask 130048   ;;  %v63_v10 = vlaneseq }
  0x26   :  { %151 = vmatprep.mubr.f32.mxu0 %v349_v0  ;;  %222 = vmatprep.mubr.f32.mxu1 %v349_v0  ;;  %v57_v3 = vld [vmem:[#allocation5 + $0x20] sm:$0xff]  ;;  %v59_v4 = vld [vmem:[#allocation5 + $0x30] sm:$0xff]  ;;  %v54_v5 = vld [vmem:[#allocation5 + $0x8] sm:$0xff]  ;;  %s350_s0 = smov [#allocation8]  }
  0x27   :  { %115 = vmatprep.subr.mxu0 %v58_v1  ;;  %186 = vmatprep.subr.mxu1 %v60_v2  ;;  %v56_v6 = vld [vmem:[#allocation5 + $0x18] sm:$0xff]  ;;  %v53_v7 = vld [vmem:[#allocation5] sm:$0xff]  ;;  %v55_v8 = vld [vmem:[#allocation5 + $0x10] sm:$0xff]  ;;  %v64_v11 = vshrl.u32 %v63_v10, 7  ;;  %s239_s2 = sshll.u32 %s350_s0, 4  ;;  %s240_s2 = int_to_ptr.vmem [resolvable:$true] %s239_s2 }
  0x28   :  { %116 = vmatpush1.msra.mxu0 %v57_v3  ;;  %187 = vmatpush1.msra.mxu1 %v59_v4  ;;  %v52_v9 = vld [vmem:[#allocation2] sm:$0xff]  ;;  %v61_v14 = vld [vmem:[#allocation7] sm:$0xf]  ;;  %s318_s28 = scalar_lea.vmem %s240_s2, 512  ;;  %p323_p2 = scmp.lt.s32.totalorder %s240_s2, %s240_s2 }
  0x29   :  { %117 = vmatprep.subr.mxu0 %v54_v5  ;;  %188 = vmatprep.subr.mxu1 %v56_v6  ;;  %v65_v12 = vsub.s32 0, %v64_v11  ;;  %v73_v13 = vsub.s32 2, %v64_v11  ;;  %v69_v15 = vsub.s32 1, %v64_v11  ;;  %v77_v16 = vsub.s32 3, %v64_v11  ;;  %p319_p1 = scmp.ne.s32.totalorder %s240_s2, %s318_s28  ;;  %p324_p3 = scmp.lt.s32.totalorder %s318_s28, %s318_s28 }
  0x2a   :  { %118 = vmatpush1.msra.mxu0 %v53_v7  ;;  %189 = vmatpush1.msra.mxu1 %v55_v8 }
  0x2b   :  { %249 = vmatmul.mubr.msk.f32.vlgmr.msra.gmra.mxu0 %vm83_vm0, %v52_v9  ;;  %250 = vmatmul.mubr.msk.f32.vlgmr.msra.gmra.mxu1 %vm83_vm0, %v52_v9  ;;  %v66_v17 = vrot.slane %v61_v14, %v65_v12  ;;  %v74_v18 = vrot.slane %v61_v14, %v73_v13  ;;  %v70_v19 = vrot.slane %v61_v14, %v69_v15  ;;  %p325_p4 = por %p324_p3, %p323_p2 }
  0x2c   :  { %v78_v20 = vrot.slane %v61_v14, %v77_v16 }
  0x2d   :  { %p326_p5 = pnand %p325_p4, %p319_p1 }
  0xeb   :  { %v153_v21 = vpop.f32.mrf.mxu0  ;;  %v224_v22 = vpop.f32.mrf.mxu1 }
  0xec   :  { %v154_v23 = vadd.f32 %v153_v21, %v66_v17  ;;  %v225_v24 = vadd.f32 %v224_v22, %v74_v18 }
  0xed   :  { %v155_v25 = vpop.f32.mrf.mxu0  ;;  %v226_v26 = vpop.f32.mrf.mxu1 }
  0xee   :  { %229 = vst [vmem:[#allocation8] sm:$0xff] %v154_v23  ;;  %231 = vst [vmem:[#allocation8 + $0x10] sm:$0xff] %v225_v24  ;;  %v156_v27 = vadd.f32 %v155_v25, %v70_v19  ;;  %v227_v28 = vadd.f32 %v226_v26, %v78_v20 }
  0xf0   :  { %230 = vst [vmem:[#allocation8 + $0x8] sm:$0xff] %v156_v27  ;;  %232 = vst [vmem:[#allocation8 + $0x18] sm:$0xff] %v227_v28 }
  0xf1   :  { %329 = shalt.err (!%p326_p5)
}
  0xf2   :  { %242 = dma.vmem_to_hbm [thread:$0]  %s240_s2, 512, %s386_s3, [#allocation4]  }
  0xf3   :  { %342 = dma.done.wait [#allocation4], 512  }
  0xf4   :  { %343 = vsyncadd [#allocation4], 4294966784 }
  0xf5   :  { %246 = vsyncpa [#allocation3], 1 }
  0xf6   :  { %247 = vsyncpa [#allocation6], 1 }
  0xf7   :  { %248 = vsyncpa [#allocation4], 1 }

</bundles_post_ra>
